<compile_context>
chip_gen: v7x
topology: tpu7x:2x2x1
jax: 0.10.0
libtpu: 0.0.40
codegen_flags: <defaults>
</compile_context>

<pallas_src>
import jax
import jax.numpy as jnp
from jax.experimental import pallas as pl
from jax.experimental.pallas import tpu as pltpu


def res_fc_block_kernel(x_ref, w1_ref, w2_ref, t1_ref, t2_ref, o_ref):
    x = x_ref[...]                                       # (tile_n, C) bf16

    # fc1: Linear (BN scale pre-folded into W1) -> + shift -> ReLU
    h = jnp.dot(x, w1_ref[...], preferred_element_type=jnp.float32)
    h = jnp.maximum(h + t1_ref[...], 0.0)                # f32 epilogue

    # fc2: Linear (BN scale pre-folded into W2) -> + shift (no activation)
    h2 = jnp.dot(h.astype(w2_ref.dtype), w2_ref[...],
                 preferred_element_type=jnp.float32)
    h2 = h2 + t2_ref[...]

    # residual add + final ReLU in f32, single cast at the store
    o_ref[...] = jnp.maximum(h2 + x.astype(jnp.float32), 0.0).astype(o_ref.dtype)


def _round_up(n, m):
    return ((n + m - 1) // m) * m


def res_fc_block(x, w1_t, w2_t, scale1, shift1, scale2, shift2, *,
                 tile_n=256, compute_dtype=jnp.bfloat16):
    """x: (N, C). w*_t: (C_in, C_out) = PyTorch W.T. scale/shift: (1, C) f32."""
    N, C = x.shape
    out_dtype = x.dtype

    # ---- parameter glue (free): fold BN scale into the weights, cast to bf16.
    w1_eff = (w1_t.astype(jnp.float32) * scale1).astype(compute_dtype)
    w2_eff = (w2_t.astype(jnp.float32) * scale2).astype(compute_dtype)
    t1 = shift1.astype(jnp.float32)
    t2 = shift2.astype(jnp.float32)
    x_in = x.astype(compute_dtype)

    # ---- lane-dense / tile-aligned padding ---------------------------------
    C_pad = _round_up(C, 128)                        # lane-dense last dim
    tile_n = _round_up(max(8, min(tile_n, N)), 8)    # sublane-aligned row tile
    N_pad = _round_up(N, tile_n)
    if (N_pad, C_pad) != (N, C):
        # Zero padding is exact: padded weight rows/cols are zero, padded shift
        # entries are zero, padded output rows/cols are sliced away below.
        x_in = jnp.pad(x_in, ((0, N_pad - N), (0, C_pad - C)))
        w1_eff = jnp.pad(w1_eff, ((0, C_pad - C), (0, C_pad - C)))
        w2_eff = jnp.pad(w2_eff, ((0, C_pad - C), (0, C_pad - C)))
        t1 = jnp.pad(t1, ((0, 0), (0, C_pad - C)))
        t2 = jnp.pad(t2, ((0, 0), (0, C_pad - C)))

    grid = (N_pad // tile_n,)
    row_spec = pl.BlockSpec((1, C_pad), lambda i: (0, 0))       # shift vectors
    mat_spec = pl.BlockSpec((C_pad, C_pad), lambda i: (0, 0))   # folded weights

    in_bytes = x_in.dtype.itemsize
    out_bytes = out_dtype.itemsize
    cost = pl.CostEstimate(
        flops=2 * 2 * N_pad * C_pad * C_pad + 4 * N_pad * C_pad,
        transcendentals=0,
        bytes_accessed=(N_pad * C_pad * in_bytes          # x
                        + N_pad * C_pad * out_bytes       # out
                        + 2 * C_pad * C_pad * in_bytes    # weights
                        + 2 * C_pad * 4),                 # shifts (f32)
    )

    out = pl.pallas_call(
        res_fc_block_kernel,
        out_shape=jax.ShapeDtypeStruct((N_pad, C_pad), out_dtype),
        grid_spec=pltpu.PrefetchScalarGridSpec(
            num_scalar_prefetch=0,
            grid=grid,
            in_specs=[
                pl.BlockSpec((tile_n, C_pad), lambda i: (i, 0)),  # x row tile
                mat_spec,                                         # W1 (scaled)
                mat_spec,                                         # W2 (scaled)
                row_spec, row_spec,                               # shift1/2
            ],
            out_specs=pl.BlockSpec((tile_n, C_pad), lambda i: (i, 0)),
        ),
        compiler_params=pltpu.CompilerParams(
            dimension_semantics=("parallel",)),
        cost_estimate=cost,
    )(x_in, w1_eff, w2_eff, t1, t2)

    if (N_pad, C_pad) != (N, C):
        out = out[:N, :C]
    return out


def _make_params(key, C, eps=1e-5):
    """Deterministic synthetic Linear + BatchNorm1d parameters (eval mode)."""
    ks = jax.random.split(key, 10)
    bound = 1.0 / jnp.sqrt(C)
    # Linear layers (PyTorch stores W as (out, in)); keep that convention here.
    w1 = jax.random.uniform(ks[0], (C, C), jnp.float32, -bound, bound)
    b1 = jax.random.uniform(ks[1], (C,), jnp.float32, -bound, bound)
    w2 = jax.random.uniform(ks[2], (C, C), jnp.float32, -bound, bound)
    b2 = jax.random.uniform(ks[3], (C,), jnp.float32, -bound, bound)
    # BatchNorm1d params / running stats.
    g1 = 1.0 + 0.1 * jax.random.normal(ks[4], (C,), jnp.float32)
    be1 = 0.1 * jax.random.normal(ks[5], (C,), jnp.float32)
    m1 = 0.1 * jax.random.normal(ks[6], (C,), jnp.float32)
    v1 = jnp.abs(1.0 + 0.1 * jax.random.normal(ks[7], (C,), jnp.float32))
    g2 = 1.0 + 0.1 * jax.random.normal(ks[8], (C,), jnp.float32)
    be2 = 0.1 * jax.random.normal(ks[9], (C,), jnp.float32)
    m2 = jnp.zeros((C,), jnp.float32)
    v2 = jnp.ones((C,), jnp.float32)

    def bn_affine(b, gamma, beta, mean, var):
        scale = gamma / jnp.sqrt(var + eps)
        shift = (b - mean) * scale + beta
        return scale.reshape(1, C), shift.reshape(1, C)

    s1, t1 = bn_affine(b1, g1, be1, m1, v1)
    s2, t2 = bn_affine(b2, g2, be2, m2, v2)
    # pre-transpose weights so the kernel computes x @ W (== x @ W_pt^T)
    return w1.T, w2.T, s1, t1, s2, t2


def _reference(x, w1_t, w2_t, scale1, shift1, scale2, shift2,
               compute_dtype=jnp.bfloat16):
    """Pure-JAX reference mirroring the kernel's bf16-operand / f32-accum math."""
    f32 = jnp.float32
    w1_eff = (w1_t.astype(f32) * scale1).astype(compute_dtype).astype(f32)
    w2_eff = (w2_t.astype(f32) * scale2).astype(compute_dtype).astype(f32)
    xf = x.astype(compute_dtype).astype(f32)
    h = jnp.maximum(xf @ w1_eff + shift1, 0.0)
    h2 = h.astype(compute_dtype).astype(f32) @ w2_eff + shift2
    out = jnp.maximum(h2 + xf, 0.0)
    return out.astype(x.dtype)


if __name__ == "__main__":
    # Lane-dense channels (multiple of 128) and 2 row tiles of 256 so the
    # pipeline / megacore parallelism are actually exercised.
    N, C = 512, 128
    key = jax.random.PRNGKey(0)
    kx, kp = jax.random.split(key)
    x = jax.random.normal(kx, (N, C), jnp.float32).astype(jnp.bfloat16)
    params = _make_params(kp, C)

    out = res_fc_block(x, *params, tile_n=256)
    out = jax.block_until_ready(out)

    ref = _reference(x, *params)
    assert out.shape == (N, C) and out.dtype == x.dtype
    assert jnp.allclose(out.astype(jnp.float32), ref.astype(jnp.float32),
                        atol=5e-2, rtol=5e-2)
    print("KERNEL_OK")
</pallas_src>

<mosaic_0001>
module attributes {stable_mosaic.version = 11 : i64} {
  func.func @res_fc_block_kernel(%arg0: i32, %arg1: memref<256x128xbf16, #tpu.memory_space<vmem>>, %arg2: memref<128x128xbf16, #tpu.memory_space<vmem>>, %arg3: memref<128x128xbf16, #tpu.memory_space<vmem>>, %arg4: memref<1x128xf32, #tpu.memory_space<vmem>>, %arg5: memref<1x128xf32, #tpu.memory_space<vmem>>, %arg6: memref<256x128xbf16, #tpu.memory_space<vmem>>) attributes {dimension_semantics = [#tpu.dimension_semantics<parallel>], iteration_bounds = array<i64: 2>, scalar_prefetch = 0 : i64, scratch_operands = 0 : i64, tpu.core_type = #tpu.core_type<tc>, window_params = [{transform_indices = @transform_0, window_bounds = array<i64: 256, 128>}, {pipeline_mode = #tpu.pipeline_mode<synchronous>, transform_indices = @transform_1, window_bounds = array<i64: 128, 128>}, {pipeline_mode = #tpu.pipeline_mode<synchronous>, transform_indices = @transform_2, window_bounds = array<i64: 128, 128>}, {pipeline_mode = #tpu.pipeline_mode<synchronous>, transform_indices = @transform_3, window_bounds = array<i64: 1, 128>}, {pipeline_mode = #tpu.pipeline_mode<synchronous>, transform_indices = @transform_4, window_bounds = array<i64: 1, 128>}, {transform_indices = @transform_5, window_bounds = array<i64: 256, 128>}]} {
    %c0 = arith.constant 0 : index
    %c0_0 = arith.constant 0 : index
    %0 = vector.load %arg1[%c0, %c0_0] : memref<256x128xbf16, #tpu.memory_space<vmem>>, vector<256x128xbf16>
    %c0_1 = arith.constant 0 : index
    %c0_2 = arith.constant 0 : index
    %1 = vector.load %arg2[%c0_1, %c0_2] : memref<128x128xbf16, #tpu.memory_space<vmem>>, vector<128x128xbf16>
    %cst = arith.constant dense<0.000000e+00> : vector<256x128xf32>
    %2 = tpu.matmul %0, %1, %cst {dimension_numbers = #tpu.dot_dimension_numbers<[1], [0], [0], [1], [0, 0, 1, 1], [], []>} : vector<256x128xbf16>, vector<128x128xbf16>, vector<256x128xf32> -> vector<256x128xf32>
    %c0_3 = arith.constant 0 : index
    %c0_4 = arith.constant 0 : index
    %3 = vector.load %arg4[%c0_3, %c0_4] : memref<1x128xf32, #tpu.memory_space<vmem>>, vector<1x128xf32>
    %4 = vector.broadcast %3 : vector<1x128xf32> to vector<256x128xf32>
    %5 = arith.addf %2, %4 : vector<256x128xf32>
    %cst_5 = arith.constant 0.000000e+00 : f32
    %6 = vector.broadcast %cst_5 : f32 to vector<256x128xf32>
    %7 = arith.maximumf %5, %6 : vector<256x128xf32>
    %8 = arith.truncf %7 : vector<256x128xf32> to vector<256x128xbf16>
    %c0_6 = arith.constant 0 : index
    %c0_7 = arith.constant 0 : index
    %9 = vector.load %arg3[%c0_6, %c0_7] : memref<128x128xbf16, #tpu.memory_space<vmem>>, vector<128x128xbf16>
    %cst_8 = arith.constant dense<0.000000e+00> : vector<256x128xf32>
    %10 = tpu.matmul %8, %9, %cst_8 {dimension_numbers = #tpu.dot_dimension_numbers<[1], [0], [0], [1], [0, 0, 1, 1], [], []>} : vector<256x128xbf16>, vector<128x128xbf16>, vector<256x128xf32> -> vector<256x128xf32>
    %c0_9 = arith.constant 0 : index
    %c0_10 = arith.constant 0 : index
    %11 = vector.load %arg5[%c0_9, %c0_10] : memref<1x128xf32, #tpu.memory_space<vmem>>, vector<1x128xf32>
    %12 = vector.broadcast %11 : vector<1x128xf32> to vector<256x128xf32>
    %13 = arith.addf %10, %12 : vector<256x128xf32>
    %14 = arith.extf %0 : vector<256x128xbf16> to vector<256x128xf32>
    %15 = arith.addf %13, %14 : vector<256x128xf32>
    %cst_11 = arith.constant 0.000000e+00 : f32
    %16 = vector.broadcast %cst_11 : f32 to vector<256x128xf32>
    %17 = arith.maximumf %15, %16 : vector<256x128xf32>
    %18 = arith.truncf %17 : vector<256x128xf32> to vector<256x128xbf16>
    %c0_12 = arith.constant 0 : index
    %c0_13 = arith.constant 0 : index
    %19 = vector.load %arg6[%c0_12, %c0_13] : memref<256x128xbf16, #tpu.memory_space<vmem>>, vector<256x128xbf16>
    tpu.vector_store %arg6[%c0_12, %c0_13], %18 {strides = array<i32>} : memref<256x128xbf16, #tpu.memory_space<vmem>>, vector<256x128xbf16>,
    return
  }
  func.func @transform_0(%arg0: i32) -> (i32, i32) {
    %c0_i32 = arith.constant 0 : i32
    %c0_i32_0 = arith.constant 0 : i32
    return %arg0, %c0_i32 : i32, i32
  }
  func.func @transform_1(%arg0: i32) -> (i32, i32) {
    %c0_i32 = arith.constant 0 : i32
    %c0_i32_0 = arith.constant 0 : i32
    %c0_i32_1 = arith.constant 0 : i32
    return %c0_i32, %c0_i32_0 : i32, i32
  }
  func.func @transform_2(%arg0: i32) -> (i32, i32) {
    %c0_i32 = arith.constant 0 : i32
    %c0_i32_0 = arith.constant 0 : i32
    %c0_i32_1 = arith.constant 0 : i32
    return %c0_i32, %c0_i32_0 : i32, i32
  }
  func.func @transform_3(%arg0: i32) -> (i32, i32) {
    %c0_i32 = arith.constant 0 : i32
    %c0_i32_0 = arith.constant 0 : i32
    %c0_i32_1 = arith.constant 0 : i32
    return %c0_i32, %c0_i32_0 : i32, i32
  }
  func.func @transform_4(%arg0: i32) -> (i32, i32) {
    %c0_i32 = arith.constant 0 : i32
    %c0_i32_0 = arith.constant 0 : i32
    %c0_i32_1 = arith.constant 0 : i32
    return %c0_i32, %c0_i32_0 : i32, i32
  }
  func.func @transform_5(%arg0: i32) -> (i32, i32) {
    %c0_i32 = arith.constant 0 : i32
    %c0_i32_0 = arith.constant 0 : i32
    return %arg0, %c0_i32 : i32, i32
  }
}

</mosaic_0001>

<bundles_post_ra>
// kernel: tpu_custom_call.1
= control target key start
LH: loop header
LB: loop body
LE: loop exit
PB: predicated region body
PF: predicated region fallthrough
CT: control target
= control target key end

     0   :  { %10 = vsyncpa [#allocation3], 0  ;;  %s2387_s0 = inlined_call_operand.hbm [shape: bf16[512,128], index: 0, kind: input, shape index: {}]   ;;  %s2388_s1 = inlined_call_operand.hbm [shape: bf16[128,128], index: 1, kind: input, shape index: {}]   ;;  %s2389_s2 = inlined_call_operand.hbm [shape: bf16[128,128], index: 2, kind: input, shape index: {}]   ;;  %s2390_s3 = inlined_call_operand.vmem [shape: f32[1,128], index: 3, kind: input, shape index: {}]   ;;  %s2391_s4 = inlined_call_operand.vmem [shape: f32[1,128], index: 4, kind: input, shape index: {}]   ;;  %s2392_s5 = inlined_call_operand.hbm [shape: bf16[512,128], index: 5, kind: output, shape index: {}]  }
   0x1   :  { %12 = vsyncpa [#allocation3 + $0x1], 0 }
   0x2   :  { %13 = vsyncpa [#allocation6], 0 }
   0x3   :  { %14 = vsyncpa [#allocation4], 0 }
   0x4   :  { %16 = vsyncpa [#allocation4 + $0x1], 0  ;;  %s1949_s18 = smov 0   ;;  %s1951_s19 = smov 0  }
   0x5   :  { %s1953_s20 = smov 0   ;;  %s1955_s21 = smov 0  }
   0x6 LB: > { %s1970_s22 = sadd.s32 4294967295, %s1909_s21   ;;  %s1277_s23 = sadd.s32 4294967294, %s1909_s21   ;;  %s1909_s21 = sphi %s1955_s21, %s2412_s21   ;;  %s1905_s20 = sphi %s1953_s20, %s2411_s20   ;;  %s1901_s19 = sphi %s1951_s19, %s2410_s19   ;;  %s1897_s18 = sphi %s1949_s18, %s2409_s18  }
   0x7   : > { %p42_p0 = scmp.ne.s32.totalorder %s1901_s19, %s1897_s18  ;;  %p2393_p1 = scmp.eq.s32.totalorder %s1970_s22, 0 }
   0x8   : > { %p156_p3 = scmp.eq.s32.totalorder %s1277_s23, 1  ;;  %p1278_p5 = scmp.ge.s32.totalorder %s1909_s21, 1 }
   0x9   : > { %p1979_p4 = por %p2393_p1, %p42_p0  ;;  %p163_p7 = scmp.lt.s32.totalorder %s1909_s21, 3 }
   0xa   : > { %p1984_p6 = por %p156_p3, %p42_p0  ;;  %s1911_s27 = smov [#allocation5]  }
   0xb   : > { %s2396_s24 = scalar_select %p1979_p4, 1, 0 }
   0xc   : > { %s2397_s25 = scalar_select %p1984_p6, 1, 0 }
   0xd   : > { %p1989_p8 = pnand %p1278_p5, %p163_p7  ;;  %s175_s28 = sshll.u32 %s1911_s27, 4  ;;  %s1993_s28 = int_to_ptr.vmem [resolvable:$true] %s175_s28 }
   0xe   : > { %s1912_s30 = smov [#allocation7]   ;;  %s1753_s9 = scalar_lea.hbm %s2388_s1, 1024 }
   0xf   : > { %p1646_p9 = pneg %p1989_p8  ;;  %s188_s6 = sshll.u32 %s1912_s30, 4  ;;  %s2004_s6 = int_to_ptr.vmem [resolvable:$true] %s188_s6 }
  0x10   : > { %p1754_p12 = scmp.ne.s32.totalorder %s2388_s1, %s1753_s9  ;;  %p1760_p5 = scmp.lt.u32.totalorder %s1753_s9, %s2388_s1 }
  0x11   : > { %p2000_p11 = pnand %p1646_p9, %p2393_p1 }
  0x13   : > { %p1755_p13 = pneg %p2000_p11 }
  0x15   : > { %p1756_p0 = pnand %p1755_p13, %p1754_p12 }
  0x17   : > { %p1757_p3 = pneg %p1756_p0 }
  0x19   : > { %p1762_p7 = pnand %p1760_p5, %p1757_p3 }
  0x1b   : > { %1765 = shalt.err (!%p1762_p7)
}
  0x1c   : > { %s1766_s14 = scalar_lea.vmem %s1993_s28, 1024  ;;  %p1774_p2 = scmp.lt.s32.totalorder %s1993_s28, %s1993_s28 }
  0x1d   : > { %p1767_p9 = scmp.ne.s32.totalorder %s1993_s28, %s1766_s14  ;;  %p1775_p12 = scmp.lt.s32.totalorder %s1766_s14, %s1766_s14 }
  0x1f   : > { %p1769_p10 = pnand %p1767_p9, %p1755_p13  ;;  %p1776_p0 = por %p1775_p12, %p1774_p2 }
  0x21   : > { %p1770_p1 = pneg %p1769_p10 }
  0x23   : > { %p1777_p6 = pnand %p1776_p0, %p1770_p1 }
  0x25   : > { %1780 = shalt.err (!%p1777_p6)
}
  0x26   : > { %s1913_s15 = smov 64   ;;  %s1914_s16 = smov 4  }
  0x27   : > { %1649 = dma.hbm_to_vmem [thread:$0]  (!%p2000_p11), %s2388_s1, 1024, %s1993_s28, [#allocation6], %s1913_s15, %s1913_s15, %s1914_s16  }
  0x28   : > { %s1781_s7 = scalar_lea.hbm %s2389_s2, 1024 }
  0x29   : > { %p1782_p1 = scmp.ne.s32.totalorder %s2389_s2, %s1781_s7  ;;  %p1788_p10 = scmp.lt.u32.totalorder %s1781_s7, %s2389_s2 }
  0x2b   : > { %p1784_p2 = pnand %p1782_p1, %p1755_p13 }
  0x2d   : > { %p1785_p6 = pneg %p1784_p2 }
  0x2f   : > { %p1790_p3 = pnand %p1788_p10, %p1785_p6 }
  0x31   : > { %1793 = shalt.err (!%p1790_p3)
}
  0x32   : > { %s1794_s28 = scalar_lea.vmem %s2004_s6, 1024  ;;  %p1802_p12 = scmp.lt.s32.totalorder %s2004_s6, %s2004_s6 }
  0x33   : > { %p1795_p5 = scmp.ne.s32.totalorder %s2004_s6, %s1794_s28  ;;  %p1803_p0 = scmp.lt.s32.totalorder %s1794_s28, %s1794_s28 }
  0x35   : > { %p1797_p7 = pnand %p1795_p5, %p1755_p13  ;;  %p1804_p1 = por %p1803_p0, %p1802_p12 }
  0x37   : > { %p1798_p9 = pneg %p1797_p7 }
  0x39   : > { %p1805_p2 = pnand %p1804_p1, %p1798_p9 }
  0x3b   : > { %1808 = shalt.err (!%p1805_p2)
}
  0x3c   : > { %1652 = dma.hbm_to_vmem [thread:$0]  (!%p2000_p11), %s2389_s2, 1024, %s2004_s6, [#allocation6], %s1913_s15, %s1913_s15, %s1914_s16  }
  0x3d   : > { %s2065_s29 = sadd.s32 1, %s1909_s21   ;;  %s29_s14 = sadd.s32 1, %s1905_s20 }
  0x3e   : > { %s26_s17 = ssub.s32 %s1909_s21, %s2065_s29  ;;  %p36_p13 = scmp.ne.s32.totalorder %s1905_s20, %s1901_s19 }
  0x3f   : > { %p27_p6 = scmp.eq.s32.totalorder %s26_s17, 0  ;;  %p37_p10 = scmp.eq.s32.totalorder %s1909_s21, 0 }
  0x40   : > { %p2400_p3 = scmp.eq.s32.totalorder %s1970_s22, 1  ;;  %p1663_p7 = scmp.lt.s32.totalorder %s1909_s21, 2 }
  0x41   : > { %s2081_s27 = scalar_select %p27_p6, %s1905_s20, %s29_s14  }
  0x42   : > { %p2075_p5 = por %p2400_p3, %p36_p13  ;;  %p38_p9 = por %p37_p10, %p36_p13 }
  0x43   : > { %s208_s30 = sand.u32 1, %s1905_s20   ;;  %s1361_s6 = sshll.u32 %s1909_s21, 11 }
  0x44   : > { %s2401_s23 = scalar_select %p2075_p5, 1, 0 }
  0x45   : > { %s1282_s7 = sshll.u32 %s208_s30, 7  ;;  %s2088_s10 = scalar_lea.hbm %s2387_s0, %s1361_s6 }
  0x46   : > { %s212_s11 = scalar_lea.vmem [#allocation2], %s1282_s7  ;;  %p2092_p11 = pnand %p1663_p7, %p38_p9 }
  0x47   : > { %s219_s28 = sshll.u32 %s212_s11, 4  ;;  %s2096_s13 = scalar_lea.sflag [#allocation3], %s208_s30  ;;  %s2090_s28 = int_to_ptr.vmem [resolvable:$true] %s219_s28 }
  0x48   : > { %s1809_s14 = scalar_lea.hbm %s2088_s10, 2048  ;;  %p1811_p0 = pneg %p2092_p11 }
  0x49   : > { %p1810_p12 = scmp.ne.s32.totalorder %s2088_s10, %s1809_s14  ;;  %s1814_s6 = scalar_lea.hbm %s2387_s0, 4096 }
  0x4a   : > { %p1815_p13 = scmp.lt.u32.totalorder %s2088_s10, %s2387_s0  ;;  %p1816_p6 = scmp.lt.u32.totalorder %s1814_s6, %s1809_s14 }
  0x4b   : > { %p1812_p1 = pnand %p1811_p0, %p1810_p12  ;;  %p1818_p3 = scmp.lt.u32.totalorder %s1809_s14, %s2088_s10 }
  0x4c   : > { %p1817_p10 = por %p1816_p6, %p1815_p13 }
  0x4d   : > { %p1813_p2 = pneg %p1812_p1 }
  0x4e   : > { %p1819_p7 = por %p1818_p3, %p1817_p10 }
  0x50   : > { %p1820_p9 = pnand %p1819_p7, %p1813_p2 }
  0x52   : > { %1823 = shalt.err (!%p1820_p9)
}
  0x53   : > { %s1824_s30 = scalar_lea.vmem %s2090_s28, 2048  ;;  %s1915_s11 = smov [#allocation2]  }
  0x54   : > { %p1825_p12 = scmp.ne.s32.totalorder %s2090_s28, %s1824_s30  ;;  %s1829_s17 = sshll.u32 %s1915_s11, 4  ;;  %s1830_s17 = int_to_ptr.vmem [resolvable:$false] %s1829_s17 }
  0x55   : > { %s1831_s7 = scalar_lea.vmem %s1830_s17, 4096  ;;  %p1832_p4 = scmp.lt.s32.totalorder %s2090_s28, %s1830_s17 }
  0x56   : > { %p1827_p1 = pnand %p1825_p12, %p1811_p0  ;;  %p1833_p13 = scmp.lt.s32.totalorder %s1831_s7, %s1824_s30 }
  0x58   : > { %p1828_p5 = pneg %p1827_p1  ;;  %p1834_p6 = por %p1833_p13, %p1832_p4 }
  0x5a   : > { %p1835_p10 = pnand %p1834_p6, %p1828_p5 }
  0x5c   : > { %1838 = shalt.err (!%p1835_p10)
}
  0x5d   : > { %1656 = dma.hbm_to_vmem [thread:$0]  (!%p2092_p11), %s2088_s10, 2048, %s2090_s28, %s2096_s13, %s1913_s15, %s1913_s15, %s1914_s16  }
  0x5e   : > { %231 = sbr.rel (%p1989_p8) target bundleno = 654 (0x28e), region = 40  ;;  %s2130_s14 = sand.u32 (!%p1989_p8), 1, %s1901_s19  }
  0x5f   : > { %s1286_s6 = sshll.u32 (!%p1989_p8), %s2130_s14, 7  ;;  %s234_s8 = scalar_lea.sflag (!%p1989_p8), [#allocation3], %s2130_s14 }
  0x60   : > { %s2136_s12 = scalar_lea.vmem (!%p1989_p8), [#allocation2], %s1286_s6  ;;  %p2403_p4 = scmp.ne.s32.totalorder (!%p1989_p8), %s2396_s24, 0 }
  0x65   : > { %1884 = dma.done.wait (%p2403_p4), %s234_s8, 2048  }
  0x66   : > { %1886 = vsyncadd (%p2403_p4), %s234_s8, 4294965248  ;;  %p2404_p5 = scmp.eq.s32.totalorder %s1970_s22, 0 }
  0x68   : > { %1888 = dma.done.wait (%p2404_p5), [#allocation6], 2048   ;;  %p2405_p8 = pmov %p2404_p5 }
  0x69   : > { %v1705_v0 = vld [vmem:[#allocation5] sm:$0xff]   ;;  %v1706_v1 = vld [vmem:[#allocation5 + $0x8] sm:$0xff]   ;;  %v1707_v2 = vld [vmem:[#allocation5 + $0x10] sm:$0xff]   ;;  %s2268_s10 = scalar_lea.vmem [#allocation8], %s1286_s6  ;;  %s1394_s28 = sshll.u32 %s1970_s22, 11 }
  0x6a   : > { %1890 = vsyncadd (%p2405_p8), [#allocation6], 4294965248  ;;  %1538 = vmatprep.subr.bf16.mxu0 %v1705_v0  ;;  %v1708_v3 = vld [vmem:[#allocation5 + $0x18] sm:$0xff]   ;;  %v2147_v4 = vld [vmem:[%s2136_s12] sm:$0xff]   ;;  %s1185_s13 = sshll.u32 %s2268_s10, 4  ;;  %s2339_s11 = scalar_lea.hbm %s2392_s5, %s1394_s28  ;;  %s2341_s13 = int_to_ptr.vmem [resolvable:$true] %s1185_s13 }
  0x6b   : > { %1539 = vmatpush3.bf16.msra.mxu0 %v1705_v0  ;;  %1554 = vmatprep.mubr.bf16.mxu0 %v2147_v4  ;;  %v1709_v5 = vld [vmem:[#allocation5 + $0x20] sm:$0xff]   ;;  %v1730_v7 = vld [vmem:[#allocation7 + $0x8] sm:$0xff]   ;;  %v1731_v9 = vld [vmem:[#allocation7 + $0x10] sm:$0xff]   ;;  %s1172_s22 = scalar_lea.sflag [#allocation4], %s2130_s14  ;;  %s1839_s17 = scalar_lea.vmem %s2341_s13, 2048 }
  0x6c   : > { %1540 = vmatprep.subr.bf16.mxu0 %v1706_v1  ;;  %v1729_v6 = vld [vmem:[#allocation7] sm:$0xff]   ;;  %v1710_v8 = vld [vmem:[#allocation5 + $0x28] sm:$0xff]   ;;  %v1711_v10 = vld [vmem:[#allocation5 + $0x30] sm:$0xff]   ;;  %p1840_p11 = scmp.ne.s32.totalorder %s2341_s13, %s1839_s17  ;;  %p2406_p0 = scmp.ne.s32.totalorder %s2401_s23, 0 }
  0x6d   : > { %1586 = vmatprep.subr.bf16.mxu1 %v1729_v6  ;;  %v1732_v11 = vld [vmem:[#allocation7 + $0x18] sm:$0xff]   ;;  %v1733_v13 = vld [vmem:[#allocation7 + $0x20] sm:$0xff]   ;;  %v2151_v14 = vld [vmem:[%s2136_s12 + $0x8] sm:$0xff]   ;;  %s1916_s7 = smov [#allocation8]  }
  0x6e   : > { %1587 = vmatpush3.bf16.msra.mxu1 %v1729_v6  ;;  %v1712_v12 = vld [vmem:[#allocation5 + $0x38] sm:$0xff]   ;;  %v2154_v15 = vld [vmem:[%s2136_s12 + $0x10] sm:$0xff]   ;;  %v1734_v16 = vld [vmem:[#allocation7 + $0x28] sm:$0xff]   ;;  %p1841_p2 = pnand %p1840_p11, %p2406_p0  ;;  %s1843_s6 = sshll.u32 %s1916_s7, 4  ;;  %s1844_s6 = int_to_ptr.vmem [resolvable:$false] %s1843_s6 }
  0x6f   : > { %1541 = vmatpush3.bf16.msra.mxu0 %v1706_v1  ;;  %1588 = vmatprep.subr.bf16.mxu1 %v1730_v7  ;;  %v2159_v17 = vld [vmem:[%s2136_s12 + $0x18] sm:$0xff]   ;;  %v2162_v18 = vld [vmem:[%s2136_s12 + $0x20] sm:$0xff]   ;;  %v2167_v19 = vld [vmem:[%s2136_s12 + $0x28] sm:$0xff]   ;;  %s1845_s8 = scalar_lea.vmem %s1844_s6, 4096  ;;  %p1846_p7 = scmp.lt.s32.totalorder %s2341_s13, %s1844_s6 }
  0x70   : > { %1542 = vmatprep.subr.bf16.mxu0 %v1707_v2  ;;  %v2170_v20 = vld [vmem:[%s2136_s12 + $0x30] sm:$0xff]   ;;  %v2175_v21 = vld [vmem:[%s2136_s12 + $0x38] sm:$0xff]   ;;  %v2178_v22 = vld [vmem:[%s2136_s12 + $0x40] sm:$0xff]   ;;  %p1842_p3 = pneg %p1841_p2  ;;  %p1847_p9 = scmp.lt.s32.totalorder %s1845_s8, %s1839_s17 }
  0x71   : > { %v2183_v23 = vld [vmem:[%s2136_s12 + $0x48] sm:$0xff]   ;;  %v2186_v24 = vld [vmem:[%s2136_s12 + $0x50] sm:$0xff]   ;;  %v2191_v25 = vld [vmem:[%s2136_s12 + $0x58] sm:$0xff]  }
  0x72   : > { %1589 = vmatpush3.bf16.msra.mxu1 %v1730_v7  ;;  %v2194_v26 = vld [vmem:[%s2136_s12 + $0x60] sm:$0xff]   ;;  %v2199_v27 = vld [vmem:[%s2136_s12 + $0x68] sm:$0xff]   ;;  %v2202_v28 = vld [vmem:[%s2136_s12 + $0x70] sm:$0xff]   ;;  %p1848_p12 = por %p1847_p9, %p1846_p7 }
  0x73   : > { %1543 = vmatpush3.bf16.msra.mxu0 %v1707_v2  ;;  %1590 = vmatprep.subr.bf16.mxu1 %v1731_v9  ;;  %v2207_v29 = vld [vmem:[%s2136_s12 + $0x78] sm:$0xff]   ;;  %v1735_v30 = vld [vmem:[#allocation7 + $0x30] sm:$0xff]   ;;  %v2213_v32 = vld [vmem:[%s2390_s3] ss:$0 sm:$0xff] }
  0x74   : > { %1544 = vmatprep.subr.bf16.mxu0 %v1708_v3  ;;  %v1736_v31 = vld [vmem:[#allocation7 + $0x38] sm:$0xff]   ;;  %p1849_p1 = pnand %p1848_p12, %p1842_p3 }
  0x76   : > { %1591 = vmatpush3.bf16.msra.mxu1 %v1731_v9 }
  0x77   : > { %1545 = vmatpush3.bf16.msra.mxu0 %v1708_v3  ;;  %1592 = vmatprep.subr.bf16.mxu1 %v1732_v11 }
  0x78   : > { %1546 = vmatprep.subr.bf16.mxu0 %v1709_v5 }
  0x7a   : > { %1593 = vmatpush3.bf16.msra.mxu1 %v1732_v11 }
  0x7b   : > { %1547 = vmatpush3.bf16.msra.mxu0 %v1709_v5  ;;  %1594 = vmatprep.subr.bf16.mxu1 %v1733_v13 }
  0x7c   : > { %1548 = vmatprep.subr.bf16.mxu0 %v1710_v8 }
  0x7e   : > { %1595 = vmatpush3.bf16.msra.mxu1 %v1733_v13 }
  0x7f   : > { %1549 = vmatpush3.bf16.msra.mxu0 %v1710_v8  ;;  %1596 = vmatprep.subr.bf16.mxu1 %v1734_v16 }
  0x80   : > { %1550 = vmatprep.subr.bf16.mxu0 %v1711_v10 }
  0x82   : > { %1597 = vmatpush3.bf16.msra.mxu1 %v1734_v16 }
  0x83   : > { %1551 = vmatpush3.bf16.msra.mxu0 %v1711_v10  ;;  %1598 = vmatprep.subr.bf16.mxu1 %v1735_v30 }
  0x84   : > { %1552 = vmatprep.subr.bf16.mxu0 %v1712_v12 }
  0x86   : > { %1599 = vmatpush3.bf16.msra.mxu1 %v1735_v30 }
  0x87   : > { %1553 = vmatpush3.bf16.msra.mxu0 %v1712_v12  ;;  %1600 = vmatprep.subr.bf16.mxu1 %v1736_v31 }
  0x8a   : > { %1555 = vmatmul.mubr.bf16.vlgmr.msra.gmra.mrb[0].mxu0 %v2151_v14  ;;  %1601 = vmatpush3.bf16.msra.mxu1 %v1736_v31 }
  0x8b   : > { %1558 = vmatprep.mubr.bf16.mxu0 %v2154_v15 }
  0x92   : > { %1559 = vmatmul.mubr.bf16.gmra.mrb[4].mxu0 %v2159_v17 }
  0x93   : > { %1562 = vmatprep.mubr.bf16.mxu0 %v2162_v18 }
  0x9a   : > { %1563 = vmatmul.mubr.bf16.gmra.mrb[8].mxu0 %v2167_v19 }
  0x9b   : > { %1566 = vmatprep.mubr.bf16.mxu0 %v2170_v20 }
  0xa2   : > { %1567 = vmatmul.mubr.bf16.gmra.mrb[12].mxu0 %v2175_v21 }
  0xa3   : > { %1570 = vmatprep.mubr.bf16.mxu0 %v2178_v22 }
  0xaa   : > { %1571 = vmatmul.mubr.bf16.gmra.mrb[16].mxu0 %v2183_v23 }
  0xab   : > { %1574 = vmatprep.mubr.bf16.mxu0 %v2186_v24 }
  0xb2   : > { %1575 = vmatmul.mubr.bf16.gmra.mrb[20].mxu0 %v2191_v25 }
  0xb3   : > { %1578 = vmatprep.mubr.bf16.mxu0 %v2194_v26 }
  0xba   : > { %1579 = vmatmul.mubr.bf16.gmra.mrb[24].mxu0 %v2199_v27 }
  0xbb   : > { %1582 = vmatprep.mubr.bf16.mxu0 %v2202_v28 }
  0xc2   : > { %1583 = vmatmul.mubr.bf16.gmra.mrb[28].mxu0 %v2207_v29 }
 0x15d   : > { %v1556_v33 = vpop.f32.mrb[0].mxu0 }
 0x15e   : > { %v517_v34 = vadd.f32 %v1556_v33, %v2213_v32  ;;  %v508_v35 = vpop.f32.mrb[1].mxu0 }
 0x15f   : > { %v509_v36 = vadd.f32 %v2213_v32, %v508_v35  ;;  %v1557_v37 = vpop.f32.mrb[2].mxu0 }
 0x160   : > { %v520_v38 = vadd.f32 %v1557_v37, %v2213_v32  ;;  %v511_v39 = vpop.f32.mrb[3].mxu0  ;;  %v637_v41 = vmax.f32 %v517_v34, 0.0 }
 0x161   : > { %v512_v40 = vadd.f32 %v2213_v32, %v511_v39  ;;  %v635_v43 = vmax.f32 %v509_v36, 0.0 }
 0x162   : > { %v638_v42 = vmax.f32 %v520_v38, 0.0 }
 0x163   : > { %v636_v44 = vmax.f32 %v512_v40, 0.0 }
 0x164   : > { %v668_v45 = vpack.c.bf16 %v638_v42, %v637_v41 }
 0x165   : > { %v1560_v46 = vpop.f32.mrb[4].mxu0  ;;  %v667_v47 = vpack.c.bf16 %v636_v44, %v635_v43 }
 0x166   : > { %v533_v48 = vadd.f32 %v1560_v46, %v2213_v32  ;;  %v524_v49 = vpop.f32.mrb[5].mxu0 }
 0x167   : > { %v525_v50 = vadd.f32 %v2213_v32, %v524_v49  ;;  %v1561_v51 = vpop.f32.mrb[6].mxu0  ;;  %1602 = vmatprep.mubr.bf16.mxu1 %v667_v47 }
 0x168   : > { %v536_v52 = vadd.f32 %v1561_v51, %v2213_v32  ;;  %v527_v53 = vpop.f32.mrb[7].mxu0  ;;  %1603 = vmatmul.mubr.bf16.vlgmr.msra.gmra.mrb[0].mxu1 %v668_v45  ;;  %v641_v55 = vmax.f32 %v533_v48, 0.0 }
 0x169   : > { %v528_v54 = vadd.f32 %v2213_v32, %v527_v53  ;;  %v639_v57 = vmax.f32 %v525_v50, 0.0 }
 0x16a   : > { %v642_v56 = vmax.f32 %v536_v52, 0.0 }
 0x16b   : > { %v640_v58 = vmax.f32 %v528_v54, 0.0 }
 0x16c   : > { %v670_v59 = vpack.c.bf16 %v642_v56, %v641_v55 }
 0x16d   : > { %v669_v60 = vpack.c.bf16 %v640_v58, %v639_v57  ;;  %v1564_v61 = vpop.f32.mrb[8].mxu0 }
 0x16e   : > { %v549_v62 = vadd.f32 %v1564_v61, %v2213_v32  ;;  %v540_v63 = vpop.f32.mrb[9].mxu0 }
 0x16f   : > { %v541_v0 = vadd.f32 %v2213_v32, %v540_v63  ;;  %v1565_v1 = vpop.f32.mrb[10].mxu0  ;;  %1606 = vmatprep.mubr.bf16.mxu1 %v669_v60 }
 0x170   : > { %v552_v2 = vadd.f32 %v1565_v1, %v2213_v32  ;;  %v543_v3 = vpop.f32.mrb[11].mxu0  ;;  %1607 = vmatmul.mubr.bf16.gmra.mrb[4].mxu1 %v670_v59  ;;  %v645_v6 = vmax.f32 %v549_v62, 0.0 }
 0x171   : > { %v544_v5 = vadd.f32 %v2213_v32, %v543_v3  ;;  %v643_v8 = vmax.f32 %v541_v0, 0.0 }
 0x172   : > { %v646_v7 = vmax.f32 %v552_v2, 0.0 }
 0x173   : > { %v644_v9 = vmax.f32 %v544_v5, 0.0 }
 0x174   : > { %v672_v10 = vpack.c.bf16 %v646_v7, %v645_v6 }
 0x175   : > { %v671_v11 = vpack.c.bf16 %v644_v9, %v643_v8  ;;  %v1568_v12 = vpop.f32.mrb[12].mxu0 }
 0x176   : > { %v565_v13 = vadd.f32 %v1568_v12, %v2213_v32  ;;  %v556_v16 = vpop.f32.mrb[13].mxu0 }
 0x177   : > { %v557_v30 = vadd.f32 %v2213_v32, %v556_v16  ;;  %v1569_v31 = vpop.f32.mrb[14].mxu0  ;;  %1610 = vmatprep.mubr.bf16.mxu1 %v671_v11 }
 0x178   : > { %v568_v33 = vadd.f32 %v1569_v31, %v2213_v32  ;;  %v559_v34 = vpop.f32.mrb[15].mxu0  ;;  %1611 = vmatmul.mubr.bf16.gmra.mrb[8].mxu1 %v672_v10  ;;  %v649_v36 = vmax.f32 %v565_v13, 0.0 }
 0x179   : > { %v560_v35 = vadd.f32 %v2213_v32, %v559_v34  ;;  %v647_v38 = vmax.f32 %v557_v30, 0.0 }
 0x17a   : > { %v650_v37 = vmax.f32 %v568_v33, 0.0 }
 0x17b   : > { %v648_v39 = vmax.f32 %v560_v35, 0.0 }
 0x17c   : > { %v674_v40 = vpack.c.bf16 %v650_v37, %v649_v36 }
 0x17d   : > { %v673_v41 = vpack.c.bf16 %v648_v39, %v647_v38  ;;  %v1572_v42 = vpop.f32.mrb[16].mxu0 }
 0x17e   : > { %v581_v43 = vadd.f32 %v1572_v42, %v2213_v32  ;;  %v572_v44 = vpop.f32.mrb[17].mxu0 }
 0x17f   : > { %v573_v45 = vadd.f32 %v2213_v32, %v572_v44  ;;  %v1573_v46 = vpop.f32.mrb[18].mxu0  ;;  %1614 = vmatprep.mubr.bf16.mxu1 %v673_v41 }
 0x180   : > { %v584_v47 = vadd.f32 %v1573_v46, %v2213_v32  ;;  %v575_v48 = vpop.f32.mrb[19].mxu0  ;;  %1615 = vmatmul.mubr.bf16.gmra.mrb[12].mxu1 %v674_v40  ;;  %v653_v50 = vmax.f32 %v581_v43, 0.0 }
 0x181   : > { %v576_v49 = vadd.f32 %v2213_v32, %v575_v48  ;;  %v651_v52 = vmax.f32 %v573_v45, 0.0 }
 0x182   : > { %v654_v51 = vmax.f32 %v584_v47, 0.0 }
 0x183   : > { %v652_v53 = vmax.f32 %v576_v49, 0.0 }
 0x184   : > { %v676_v54 = vpack.c.bf16 %v654_v51, %v653_v50  ;;  %v2250_v51 = vld [vmem:[%s2391_s4] ss:$0 sm:$0xff] }
 0x185   : > { %v675_v55 = vpack.c.bf16 %v652_v53, %v651_v52  ;;  %v1576_v56 = vpop.f32.mrb[20].mxu0  ;;  %v917_v52 = vunpack.c.l.bf16 %v2151_v14  ;;  %v915_v53 = vunpack.c.l.bf16 %v2147_v4 }
 0x186   : > { %v597_v57 = vadd.f32 %v1576_v56, %v2213_v32  ;;  %v588_v58 = vpop.f32.mrb[21].mxu0  ;;  %v918_v56 = vunpack.c.h.bf16 %v2151_v14 }
 0x187   : > { %v589_v59 = vadd.f32 %v2213_v32, %v588_v58  ;;  %v1577_v60 = vpop.f32.mrb[22].mxu0  ;;  %1618 = vmatprep.mubr.bf16.mxu1 %v675_v55 }
 0x188   : > { %v600_v61 = vadd.f32 %v1577_v60, %v2213_v32  ;;  %v591_v62 = vpop.f32.mrb[23].mxu0  ;;  %1619 = vmatmul.mubr.bf16.gmra.mrb[16].mxu1 %v676_v54  ;;  %v657_v0 = vmax.f32 %v597_v57, 0.0  ;;  %v916_v57 = vunpack.c.h.bf16 %v2147_v4 }
 0x189   : > { %v592_v63 = vadd.f32 %v2213_v32, %v591_v62  ;;  %v655_v2 = vmax.f32 %v589_v59, 0.0 }
 0x18a   : > { %v658_v1 = vmax.f32 %v600_v61, 0.0 }
 0x18b   : > { %v656_v3 = vmax.f32 %v592_v63, 0.0 }
 0x18c   : > { %v678_v5 = vpack.c.bf16 %v658_v1, %v657_v0 }
 0x18d   : > { %v677_v6 = vpack.c.bf16 %v656_v3, %v655_v2  ;;  %v1580_v7 = vpop.f32.mrb[24].mxu0 }
 0x18e   : > { %v613_v8 = vadd.f32 %v1580_v7, %v2213_v32  ;;  %v604_v9 = vpop.f32.mrb[25].mxu0 }
 0x18f   : > { %v605_v10 = vadd.f32 %v2213_v32, %v604_v9  ;;  %v1581_v11 = vpop.f32.mrb[26].mxu0  ;;  %1622 = vmatprep.mubr.bf16.mxu1 %v677_v6  ;;  %v921_v6 = vunpack.c.l.bf16 %v2159_v17 }
 0x190   : > { %v616_v12 = vadd.f32 %v1581_v11, %v2213_v32  ;;  %v607_v13 = vpop.f32.mrb[27].mxu0  ;;  %1623 = vmatmul.mubr.bf16.gmra.mrb[20].mxu1 %v678_v5  ;;  %v661_v30 = vmax.f32 %v613_v8, 0.0  ;;  %v919_v8 = vunpack.c.l.bf16 %v2154_v15 }
 0x191   : > { %v608_v16 = vadd.f32 %v2213_v32, %v607_v13  ;;  %v659_v33 = vmax.f32 %v605_v10, 0.0 }
 0x192   : > { %v662_v31 = vmax.f32 %v616_v12, 0.0  ;;  %v922_v12 = vunpack.c.h.bf16 %v2159_v17 }
 0x193   : > { %v660_v34 = vmax.f32 %v608_v16, 0.0 }
 0x194   : > { %v680_v35 = vpack.c.bf16 %v662_v31, %v661_v30  ;;  %v920_v31 = vunpack.c.h.bf16 %v2154_v15  ;;  %v925_v15 = vunpack.c.l.bf16 %v2167_v19 }
 0x195   : > { %v679_v36 = vpack.c.bf16 %v660_v34, %v659_v33  ;;  %v1584_v37 = vpop.f32.mrb[28].mxu0 }
 0x196   : > { %v629_v38 = vadd.f32 %v1584_v37, %v2213_v32  ;;  %v620_v39 = vpop.f32.mrb[29].mxu0 }
 0x197   : > { %v621_v40 = vadd.f32 %v2213_v32, %v620_v39  ;;  %v1585_v41 = vpop.f32.mrb[30].mxu0  ;;  %1626 = vmatprep.mubr.bf16.mxu1 %v679_v36 }
 0x198   : > { %v632_v42 = vadd.f32 %v1585_v41, %v2213_v32  ;;  %v623_v43 = vpop.f32.mrb[31].mxu0  ;;  %1627 = vmatmul.mubr.bf16.gmra.mrb[24].mxu1 %v680_v35  ;;  %v665_v45 = vmax.f32 %v629_v38, 0.0 }
 0x199   : > { %v624_v44 = vadd.f32 %v2213_v32, %v623_v43  ;;  %v663_v47 = vmax.f32 %v621_v40, 0.0 }
 0x19a   : > { %v666_v46 = vmax.f32 %v632_v42, 0.0 }
 0x19b   : > { %v664_v48 = vmax.f32 %v624_v44, 0.0  ;;  %v923_v44 = vunpack.c.l.bf16 %v2162_v18 }
 0x19c   : > { %v682_v49 = vpack.c.bf16 %v666_v46, %v665_v45 }
 0x19d   : > { %v681_v50 = vpack.c.bf16 %v664_v48, %v663_v47  ;;  %v926_v48 = vunpack.c.h.bf16 %v2167_v19 }
 0x19f   : > { %1630 = vmatprep.mubr.bf16.mxu1 %v681_v50 }
 0x1a0   : > { %1631 = vmatmul.mubr.bf16.gmra.mrb[28].mxu1 %v682_v49 }
 0x23b   : > { %v1604_v54 = vpop.f32.mrb[0].mxu1 }
 0x23c   : > { %v797_v32 = vadd.f32 %v1604_v54, %v2250_v51  ;;  %v788_v55 = vpop.f32.mrb[1].mxu1 }
 0x23d   : > { %v789_v58 = vadd.f32 %v2250_v51, %v788_v55  ;;  %v1605_v59 = vpop.f32.mrb[2].mxu1 }
 0x23e   : > { %v949_v60 = vadd.f32 %v917_v52, %v797_v32  ;;  %v800_v61 = vadd.f32 %v1605_v59, %v2250_v51  ;;  %v791_v62 = vpop.f32.mrb[3].mxu1 }
 0x23f   : > { %v947_v63 = vadd.f32 %v915_v53, %v789_v58  ;;  %v792_v0 = vadd.f32 %v2250_v51, %v791_v62  ;;  %v924_v53 = vunpack.c.h.bf16 %v2162_v18 }
 0x240   : > { %v950_v1 = vadd.f32 %v918_v56, %v800_v61  ;;  %v981_v3 = vmax.f32 %v949_v60, 0.0  ;;  %v929_v61 = vunpack.c.l.bf16 %v2175_v21 }
 0x241   : > { %v948_v2 = vadd.f32 %v916_v57, %v792_v0  ;;  %v979_v14 = vmax.f32 %v947_v63, 0.0  ;;  %v927_v0 = vunpack.c.l.bf16 %v2170_v20 }
 0x242   : > { %v982_v5 = vmax.f32 %v950_v1, 0.0 }
 0x243   : > { %v980_v7 = vmax.f32 %v948_v2, 0.0  ;;  %v1608_v4 = vpop.f32.mrb[4].mxu1 }
 0x244   : > { %v1403_v9 = vpack.c.bf16 %v982_v5, %v981_v3  ;;  %v813_v10 = vadd.f32 %v1608_v4, %v2250_v51  ;;  %v804_v11 = vpop.f32.mrb[5].mxu1  ;;  %v930_v5 = vunpack.c.h.bf16 %v2175_v21  ;;  %v928_v4 = vunpack.c.h.bf16 %v2170_v20 }
 0x245   : > { %v1398_v13 = vpack.c.bf16 %v980_v7, %v979_v14  ;;  %v805_v16 = vadd.f32 %v2250_v51, %v804_v11  ;;  %v1609_v30 = vpop.f32.mrb[6].mxu1 }
 0x246   : > { %1475 = vst [vmem:[%s2268_s10 + $0x8] sm:$0xff] %v1403_v9   ;;  %v953_v33 = vadd.f32 %v921_v6, %v813_v10  ;;  %v816_v34 = vadd.f32 %v1609_v30, %v2250_v51  ;;  %v807_v35 = vpop.f32.mrb[7].mxu1 }
 0x247   : > { %1399 = vst [vmem:[%s2268_s10] sm:$0xff] %v1398_v13   ;;  %v951_v36 = vadd.f32 %v919_v8, %v805_v16  ;;  %v808_v17 = vadd.f32 %v2250_v51, %v807_v35  ;;  %v931_v35 = vunpack.c.l.bf16 %v2178_v22 }
 0x248   : > { %v954_v37 = vadd.f32 %v922_v12, %v816_v34  ;;  %v985_v39 = vmax.f32 %v953_v33, 0.0 }
 0x249   : > { %v952_v38 = vadd.f32 %v920_v31, %v808_v17  ;;  %v983_v41 = vmax.f32 %v951_v36, 0.0  ;;  %v933_v31 = vunpack.c.l.bf16 %v2183_v23 }
 0x24a   : > { %v986_v40 = vmax.f32 %v954_v37, 0.0 }
 0x24b   : > { %v984_v42 = vmax.f32 %v952_v38, 0.0  ;;  %v1612_v43 = vpop.f32.mrb[8].mxu1  ;;  %v934_v38 = vunpack.c.h.bf16 %v2183_v23 }
 0x24c   : > { %v1413_v45 = vpack.c.bf16 %v986_v40, %v985_v39  ;;  %v829_v46 = vadd.f32 %v1612_v43, %v2250_v51  ;;  %v820_v47 = vpop.f32.mrb[9].mxu1 }
 0x24d   : > { %v1408_v49 = vpack.c.bf16 %v984_v42, %v983_v41  ;;  %v821_v50 = vadd.f32 %v2250_v51, %v820_v47  ;;  %v1613_v52 = vpop.f32.mrb[10].mxu1  ;;  %v932_v41 = vunpack.c.h.bf16 %v2178_v22 }
 0x24e   : > { %1477 = vst [vmem:[%s2268_s10 + $0x18] sm:$0xff] %v1413_v45   ;;  %v957_v54 = vadd.f32 %v925_v15, %v829_v46  ;;  %v832_v32 = vadd.f32 %v1613_v52, %v2250_v51  ;;  %v823_v55 = vpop.f32.mrb[11].mxu1 }
 0x24f   : > { %1476 = vst [vmem:[%s2268_s10 + $0x10] sm:$0xff] %v1408_v49   ;;  %v955_v56 = vadd.f32 %v923_v44, %v821_v50  ;;  %v824_v57 = vadd.f32 %v2250_v51, %v823_v55  ;;  %v937_v50 = vunpack.c.l.bf16 %v2191_v25 }
 0x250   : > { %v958_v58 = vadd.f32 %v926_v48, %v832_v32  ;;  %v989_v60 = vmax.f32 %v957_v54, 0.0  ;;  %v935_v54 = vunpack.c.l.bf16 %v2186_v24 }
 0x251   : > { %v956_v59 = vadd.f32 %v924_v53, %v824_v57  ;;  %v987_v62 = vmax.f32 %v955_v56, 0.0  ;;  %v938_v57 = vunpack.c.h.bf16 %v2191_v25 }
 0x252   : > { %v990_v19 = vmax.f32 %v958_v58, 0.0 }
 0x253   : > { %v988_v63 = vmax.f32 %v956_v59, 0.0  ;;  %v1616_v18 = vpop.f32.mrb[12].mxu1 }
 0x254   : > { %v1423_v1 = vpack.c.bf16 %v990_v19, %v989_v60  ;;  %v845_v2 = vadd.f32 %v1616_v18, %v2250_v51  ;;  %v836_v3 = vpop.f32.mrb[13].mxu1  ;;  %v936_v19 = vunpack.c.h.bf16 %v2186_v24 }
 0x255   : > { %v1418_v6 = vpack.c.bf16 %v988_v63, %v987_v62  ;;  %v837_v14 = vadd.f32 %v2250_v51, %v836_v3  ;;  %v1617_v7 = vpop.f32.mrb[14].mxu1 }
 0x256   : > { %1479 = vst [vmem:[%s2268_s10 + $0x28] sm:$0xff] %v1423_v1   ;;  %v961_v8 = vadd.f32 %v929_v61, %v845_v2  ;;  %v848_v9 = vadd.f32 %v1617_v7, %v2250_v51  ;;  %v839_v10 = vpop.f32.mrb[15].mxu1  ;;  %v939_v7 = vunpack.c.l.bf16 %v2194_v26 }
 0x257   : > { %1478 = vst [vmem:[%s2268_s10 + $0x20] sm:$0xff] %v1418_v6   ;;  %v959_v11 = vadd.f32 %v927_v0, %v837_v14  ;;  %v840_v12 = vadd.f32 %v2250_v51, %v839_v10  ;;  %v942_v10 = vunpack.c.h.bf16 %v2199_v27 }
 0x258   : > { %v962_v13 = vadd.f32 %v930_v5, %v848_v9  ;;  %v993_v30 = vmax.f32 %v961_v8, 0.0  ;;  %v941_v5 = vunpack.c.l.bf16 %v2199_v27 }
 0x259   : > { %v960_v16 = vadd.f32 %v928_v4, %v840_v12  ;;  %v991_v33 = vmax.f32 %v959_v11, 0.0 }
 0x25a   : > { %v994_v21 = vmax.f32 %v962_v13, 0.0 }
 0x25b   : > { %v992_v34 = vmax.f32 %v960_v16, 0.0  ;;  %v1620_v20 = vpop.f32.mrb[16].mxu1  ;;  %v940_v16 = vunpack.c.h.bf16 %v2194_v26 }
 0x25c   : > { %v1433_v36 = vpack.c.bf16 %v994_v21, %v993_v30  ;;  %v861_v17 = vadd.f32 %v1620_v20, %v2250_v51  ;;  %v852_v37 = vpop.f32.mrb[17].mxu1 }
 0x25d   : > { %v1428_v39 = vpack.c.bf16 %v992_v34, %v991_v33  ;;  %v853_v40 = vadd.f32 %v2250_v51, %v852_v37  ;;  %v1621_v15 = vpop.f32.mrb[18].mxu1 }
 0x25e   : > { %1481 = vst [vmem:[%s2268_s10 + $0x38] sm:$0xff] %v1433_v36   ;;  %v965_v42 = vadd.f32 %v933_v31, %v861_v17  ;;  %v864_v43 = vadd.f32 %v1621_v15, %v2250_v51  ;;  %v855_v44 = vpop.f32.mrb[19].mxu1  ;;  %v945_v17 = vunpack.c.l.bf16 %v2207_v29 }
 0x25f   : > { %1480 = vst [vmem:[%s2268_s10 + $0x30] sm:$0xff] %v1428_v39   ;;  %v963_v45 = vadd.f32 %v931_v35, %v853_v40  ;;  %v856_v46 = vadd.f32 %v2250_v51, %v855_v44  ;;  %v943_v39 = vunpack.c.l.bf16 %v2202_v28 }
 0x260   : > { %v966_v47 = vadd.f32 %v934_v38, %v864_v43  ;;  %v997_v49 = vmax.f32 %v965_v42, 0.0  ;;  %v946_v42 = vunpack.c.h.bf16 %v2207_v29 }
 0x261   : > { %v964_v48 = vadd.f32 %v932_v41, %v856_v46  ;;  %v995_v52 = vmax.f32 %v963_v45, 0.0  ;;  %v944_v46 = vunpack.c.h.bf16 %v2202_v28 }
 0x262   : > { %v998_v23 = vmax.f32 %v966_v47, 0.0 }
 0x263   : > { %v996_v53 = vmax.f32 %v964_v48, 0.0  ;;  %v1624_v22 = vpop.f32.mrb[20].mxu1 }
 0x264   : > { %v1443_v32 = vpack.c.bf16 %v998_v23, %v997_v49  ;;  %v877_v55 = vadd.f32 %v1624_v22, %v2250_v51  ;;  %v868_v56 = vpop.f32.mrb[21].mxu1 }
 0x265   : > { %v1438_v58 = vpack.c.bf16 %v996_v53, %v995_v52  ;;  %v869_v59 = vadd.f32 %v2250_v51, %v868_v56  ;;  %v1625_v60 = vpop.f32.mrb[22].mxu1 }
 0x266   : > { %1483 = vst [vmem:[%s2268_s10 + $0x48] sm:$0xff] %v1443_v32   ;;  %v969_v61 = vadd.f32 %v937_v50, %v877_v55  ;;  %v880_v62 = vadd.f32 %v1625_v60, %v2250_v51  ;;  %v871_v63 = vpop.f32.mrb[23].mxu1 }
 0x267   : > { %1482 = vst [vmem:[%s2268_s10 + $0x40] sm:$0xff] %v1438_v58   ;;  %v967_v18 = vadd.f32 %v935_v54, %v869_v59  ;;  %v872_v0 = vadd.f32 %v2250_v51, %v871_v63 }
 0x268   : > { %v970_v1 = vadd.f32 %v938_v57, %v880_v62  ;;  %v1001_v3 = vmax.f32 %v969_v61, 0.0 }
 0x269   : > { %v968_v2 = vadd.f32 %v936_v19, %v872_v0  ;;  %v999_v6 = vmax.f32 %v967_v18, 0.0 }
 0x26a   : > { %v1002_v25 = vmax.f32 %v970_v1, 0.0 }
 0x26b   : > { %v1000_v14 = vmax.f32 %v968_v2, 0.0  ;;  %v1628_v24 = vpop.f32.mrb[24].mxu1 }
 0x26c   : > { %v1453_v4 = vpack.c.bf16 %v1002_v25, %v1001_v3  ;;  %v893_v8 = vadd.f32 %v1628_v24, %v2250_v51  ;;  %v884_v9 = vpop.f32.mrb[25].mxu1 }
 0x26d   : > { %v1448_v11 = vpack.c.bf16 %v1000_v14, %v999_v6  ;;  %v885_v12 = vadd.f32 %v2250_v51, %v884_v9  ;;  %v1629_v13 = vpop.f32.mrb[26].mxu1 }
 0x26e   : > { %1485 = vst [vmem:[%s2268_s10 + $0x58] sm:$0xff] %v1453_v4   ;;  %v973_v30 = vadd.f32 %v941_v5, %v893_v8  ;;  %v896_v21 = vadd.f32 %v1629_v13, %v2250_v51  ;;  %v887_v31 = vpop.f32.mrb[27].mxu1 }
 0x26f   : > { %1484 = vst [vmem:[%s2268_s10 + $0x50] sm:$0xff] %v1448_v11   ;;  %v971_v33 = vadd.f32 %v939_v7, %v885_v12  ;;  %v888_v34 = vadd.f32 %v2250_v51, %v887_v31 }
 0x270   : > { %v974_v20 = vadd.f32 %v942_v10, %v896_v21  ;;  %v1005_v36 = vmax.f32 %v973_v30, 0.0 }
 0x271   : > { %v972_v35 = vadd.f32 %v940_v16, %v888_v34  ;;  %v1003_v37 = vmax.f32 %v971_v33, 0.0 }
 0x272   : > { %v1006_v27 = vmax.f32 %v974_v20, 0.0 }
 0x273   : > { %v1004_v38 = vmax.f32 %v972_v35, 0.0  ;;  %v1632_v26 = vpop.f32.mrb[28].mxu1 }
 0x274   : > { %v1463_v40 = vpack.c.bf16 %v1006_v27, %v1005_v36  ;;  %v909_v15 = vadd.f32 %v1632_v26, %v2250_v51  ;;  %v900_v41 = vpop.f32.mrb[29].mxu1 }
 0x275   : > { %v1458_v43 = vpack.c.bf16 %v1004_v38, %v1003_v37  ;;  %v901_v44 = vadd.f32 %v2250_v51, %v900_v41  ;;  %v1633_v45 = vpop.f32.mrb[30].mxu1 }
 0x276   : > { %1487 = vst [vmem:[%s2268_s10 + $0x68] sm:$0xff] %v1463_v40   ;;  %v977_v47 = vadd.f32 %v945_v17, %v909_v15  ;;  %v912_v48 = vadd.f32 %v1633_v45, %v2250_v51  ;;  %v903_v49 = vpop.f32.mrb[31].mxu1 }
 0x277   : > { %1486 = vst [vmem:[%s2268_s10 + $0x60] sm:$0xff] %v1458_v43   ;;  %v975_v23 = vadd.f32 %v943_v39, %v901_v44  ;;  %v904_v50 = vadd.f32 %v2250_v51, %v903_v49 }
 0x278   : > { %v978_v52 = vadd.f32 %v946_v42, %v912_v48  ;;  %v1009_v53 = vmax.f32 %v977_v47, 0.0 }
 0x279   : > { %v976_v29 = vadd.f32 %v944_v46, %v904_v50  ;;  %v1007_v28 = vmax.f32 %v975_v23, 0.0 }
 0x27a   : > { %v1010_v22 = vmax.f32 %v978_v52, 0.0 }
 0x27b   : > { %v1008_v54 = vmax.f32 %v976_v29, 0.0 }
 0x27c   : > { %v1473_v32 = vpack.c.bf16 %v1010_v22, %v1009_v53 }
 0x27d   : > { %v1468_v51 = vpack.c.bf16 %v1008_v54, %v1007_v28 }
 0x27e   : > { %1489 = vst [vmem:[%s2268_s10 + $0x78] sm:$0xff] %v1473_v32  }
 0x27f   : > { %1488 = vst [vmem:[%s2268_s10 + $0x70] sm:$0xff] %v1468_v51  }
 0x280   : > { %1852 = shalt.err (!%p1849_p1)
}
 0x281   : > { %s1853_s12 = scalar_lea.hbm %s2339_s11, 2048  ;;  %s1857_s15 = scalar_lea.hbm %s2392_s5, 4096 }
 0x282   : > { %p1854_p13 = scmp.ne.s32.totalorder %s2339_s11, %s1853_s12  ;;  %p1858_p4 = scmp.lt.u32.totalorder %s2339_s11, %s2392_s5 }
 0x283   : > { %p1859_p5 = scmp.lt.u32.totalorder %s1857_s15, %s1853_s12  ;;  %p1861_p11 = scmp.lt.u32.totalorder %s1853_s12, %s2339_s11 }
 0x284   : > { %p1855_p6 = pnand %p1854_p13, %p2406_p0 }
 0x285   : > { %p1860_p8 = por %p1859_p5, %p1858_p4 }
 0x286   : > { %p1856_p10 = pneg %p1855_p6 }
 0x287   : > { %p1862_p2 = por %p1861_p11, %p1860_p8 }
 0x289   : > { %p1863_p3 = pnand %p1862_p2, %p1856_p10 }
 0x28b   : > { %1866 = shalt.err (!%p1863_p3)
}
 0x28c   : > { %s1917_s28 = smov 64   ;;  %s1918_s9 = smov 4  }
 0x28d   : > { %1644 = dma.vmem_to_hbm [thread:$0]  (%p2406_p0), %s2341_s13, 2048, %s2339_s11, %s1172_s22, %s1917_s28, %s1917_s28, %s1918_s9  }
 0x28e PF: > { %s1200_s30 = sand.u32 1, %s1897_s18   ;;  %p2407_p7 = scmp.ne.s32.totalorder %s2397_s25, 0 }
 0x28f   : > { %p2408_p9 = scmp.ge.s32.totalorder %s1909_s21, 2  ;;  %s1201_s17 = scalar_lea.sflag [#allocation4], %s1200_s30 }
 0x291   : > { %p1658_p12 = pnand %p2408_p9, %p2407_p7 }
 0x293   : > { %1892 = dma.done.wait (!%p1658_p12), %s1201_s17, 2048  }
 0x294   : > { %1894 = vsyncadd (!%p1658_p12), %s1201_s17, 4294965248  ;;  %p19_p1 = scmp.ge.s32.totalorder %s2065_s29, 4   ;;  %s2409_s18 = smov %s1901_s19 }
 0x295   : > { %s2410_s19 = smov %s1905_s20  ;;  %s2411_s20 = smov %s2081_s27 }
 0x296   : > { %s2412_s21 = smov %s2065_s29  ;;  %21 = sbr.rel (!%p19_p1) target bundleno = 6 (0x6), region = 93 }
 0x29d   :  { %1206 = vsyncpa [#allocation3], 1 }
 0x29e   :  { %1208 = vsyncpa [#allocation3 + $0x1], 1 }
 0x29f   :  { %1209 = vsyncpa [#allocation6], 1 }
 0x2a0   :  { %1210 = vsyncpa [#allocation4], 1 }
 0x2a1   :  { %1212 = vsyncpa [#allocation4 + $0x1], 1 }

</bundles_post_ra>
